<compile_context>
chip_gen: v7x
topology: tpu7x:2x2x1
jax: 0.10.0
libtpu: 0.0.40
codegen_flags: <defaults>
</compile_context>

<pallas_src>
import functools
import math

import jax
import jax.numpy as jnp
import numpy as np
from jax.experimental import pallas as pl
from jax.experimental.pallas import tpu as pltpu

INPUT_DIM = 4
NUM_HEADS = 2
HEAD_DIM = INPUT_DIM // NUM_HEADS
_ROW = 8  # sublane alignment for slab blocks


def _attention_kernel(x_ref, slab_ref, o_ref, *, L, N, S):
    E, H, D = INPUT_DIM, NUM_HEADS, HEAD_DIM
    LN, SN = L * N, S * N

    # Stacked, bias-augmented input: rows [0:LN) = q, [LN:LN+SN) = k, [LN+SN:) = v.
    # Row offsets are multiples of 8 -> sublane-aligned ref slices (no relayout).
    xq = x_ref[0:LN, :].astype(jnp.float32)                 # (LN, E+1)
    xk = x_ref[LN:LN + SN, :].astype(jnp.float32)           # (SN, E+1)
    xv = x_ref[LN + SN:LN + 2 * SN, :].astype(jnp.float32)  # (SN, E+1)

    # Block-diagonal batch mask as a finite ADDITIVE bias, built once (not per head).
    # Query row r = l*N + n may only attend to key row c = s*N + n' with n == n'.
    r = jax.lax.broadcasted_iota(jnp.int32, (LN, SN), 0)
    c = jax.lax.broadcasted_iota(jnp.int32, (LN, SN), 1)
    mask_bias = jnp.where((r % N) == (c % N), 0.0, -1e30).astype(jnp.float32)

    # Fused output bias (bo @ Wl.T + bl), broadcast once as the accumulator init.
    b_out = slab_ref[4 * H * _ROW:4 * H * _ROW + 1, 0:E]    # (1, E), 8-aligned row
    out = jnp.broadcast_to(b_out, (LN, E))

    for h in range(H):  # static, fully unrolled (H = 2)
        # Per-head packed weights; every block starts at an 8-multiple row, lane 0.
        wq = slab_ref[(h * 3 + 0) * _ROW:(h * 3 + 0) * _ROW + E + 1, 0:D]  # (E+1, D)
        wk = slab_ref[(h * 3 + 1) * _ROW:(h * 3 + 1) * _ROW + E + 1, 0:D]
        wv = slab_ref[(h * 3 + 2) * _ROW:(h * 3 + 2) * _ROW + E + 1, 0:D]
        wo = slab_ref[(3 * H + h) * _ROW:(3 * H + h) * _ROW + D, 0:E]      # (D, E)

        # Projections: biases ride in the last weight row (ones column in x),
        # 1/sqrt(D) already folded into wq.
        Qh = jnp.dot(xq, wq, preferred_element_type=jnp.float32)   # (LN, D)
        Kh = jnp.dot(xk, wk, preferred_element_type=jnp.float32)   # (SN, D)
        Vh = jnp.dot(xv, wv, preferred_element_type=jnp.float32)   # (SN, D)

        scores = jax.lax.dot_general(Qh, Kh, (((1,), (1,)), ((), ())),
                                     preferred_element_type=jnp.float32)  # (LN, SN)
        scores = scores + mask_bias
        scores = scores - jnp.max(scores, axis=-1, keepdims=True)
        p = jnp.exp(scores)
        p = p * pl.reciprocal(jnp.sum(p, axis=-1, keepdims=True))  # exact: 1e-5 tol

        oh = jnp.dot(p, Vh, preferred_element_type=jnp.float32)    # (LN, D)
        # (out_proj ∘ final Linear) fused: accumulate this head's contribution.
        out = out + jnp.dot(oh, wo, preferred_element_type=jnp.float32)

    o_ref[...] = out.astype(o_ref.dtype)


def pack_params(params):
    """One-time packing of all module parameters into a single 8-row-aligned slab."""
    E, H, D = INPUT_DIM, NUM_HEADS, HEAD_DIM
    scale = 1.0 / math.sqrt(D)
    rows = (4 * H + 1) * _ROW  # 3H qkv blocks + H out blocks + 1 output-bias block
    slab = jnp.zeros((rows, E), jnp.float32)

    def aug(w, b, s):
        # (E+1, D): pre-transposed per-head weight with its bias folded into the last row.
        return jnp.concatenate([(w * s).T, b * s], axis=0)

    w_out = (params["wl"] @ params["wo"]).T               # (E, E)  out_proj ∘ final Linear
    b_out = params["bo"] @ params["wl"].T + params["bl"]  # (1, E)

    for h in range(H):
        lo, hi = h * D, (h + 1) * D
        blocks = [
            (params["wq"][lo:hi], params["bq"][:, lo:hi], scale),  # scale folded here
            (params["wk"][lo:hi], params["bk"][:, lo:hi], 1.0),
            (params["wv"][lo:hi], params["bv"][:, lo:hi], 1.0),
        ]
        for j, (w, b, s) in enumerate(blocks):
            r0 = (h * 3 + j) * _ROW
            slab = slab.at[r0:r0 + E + 1, 0:D].set(aug(w, b, s))
        r0 = (3 * H + h) * _ROW
        slab = slab.at[r0:r0 + D, 0:E].set(w_out[lo:hi, :])
    slab = slab.at[4 * H * _ROW:4 * H * _ROW + 1, 0:E].set(b_out)
    return slab


@jax.jit
def simple_attention_forward(q, k, v, slab):
    """q: (L, N, E), k/v: (S, N, E) (PyTorch seq-first layout). Returns (L, N, E)."""
    L, N, E = q.shape
    S = k.shape[0]

    # Stack q/k/v into ONE input (contiguous reshapes + concat, fused under jit) and
    # append a ones column so projection biases are folded into the matmuls.
    x2 = jnp.concatenate(
        [q.reshape(L * N, E), k.reshape(S * N, E), v.reshape(S * N, E)], axis=0)
    x_aug = jnp.concatenate([x2, jnp.ones((x2.shape[0], 1), x2.dtype)], axis=1)

    vmem = pltpu.MemorySpace.VMEM
    out2 = pl.pallas_call(
        functools.partial(_attention_kernel, L=L, N=N, S=S),
        out_shape=jax.ShapeDtypeStruct((L * N, E), q.dtype),
        in_specs=[pl.BlockSpec(memory_space=vmem),
                  pl.BlockSpec(memory_space=vmem)],
        out_specs=pl.BlockSpec(memory_space=vmem),
    )(x_aug, slab)
    return out2.reshape(L, N, E)


def _reference(q, k, v, p):
    """Pure-JAX reference mirroring torch.nn.MultiheadAttention + Linear."""
    L, N, E = q.shape
    S = k.shape[0]
    H, D = NUM_HEADS, HEAD_DIM
    Q = jnp.einsum('lne,fe->lnf', q, p["wq"]) + p["bq"][0]
    K = jnp.einsum('sne,fe->snf', k, p["wk"]) + p["bk"][0]
    V = jnp.einsum('sne,fe->snf', v, p["wv"]) + p["bv"][0]
    Qh = Q.reshape(L, N, H, D)
    Kh = K.reshape(S, N, H, D)
    Vh = V.reshape(S, N, H, D)
    s = jnp.einsum('lnhd,snhd->nhls', Qh, Kh) / math.sqrt(D)
    a = jax.nn.softmax(s, axis=-1)
    o = jnp.einsum('nhls,snhd->lnhd', a, Vh).reshape(L, N, E)
    o = jnp.einsum('lne,fe->lnf', o, p["wo"]) + p["bo"][0]
    return jnp.einsum('lne,fe->lnf', o, p["wl"]) + p["bl"][0]


def init_params(key, embed_dim):
    """Deterministic synthetic parameters (shapes follow nn.MultiheadAttention / nn.Linear)."""
    ks = jax.random.split(key, 6)
    E = embed_dim
    scale = 1.0 / math.sqrt(E)
    in_proj_w = jax.random.uniform(ks[0], (3 * E, E), jnp.float32, -scale, scale)
    in_proj_b = jax.random.uniform(ks[1], (1, 3 * E), jnp.float32, -scale, scale)
    return {
        "wq": in_proj_w[0 * E:1 * E], "wk": in_proj_w[1 * E:2 * E], "wv": in_proj_w[2 * E:3 * E],
        "bq": in_proj_b[:, 0 * E:1 * E], "bk": in_proj_b[:, 1 * E:2 * E], "bv": in_proj_b[:, 2 * E:3 * E],
        "wo": jax.random.uniform(ks[2], (E, E), jnp.float32, -scale, scale),
        "bo": jax.random.uniform(ks[3], (1, E), jnp.float32, -scale, scale),
        "wl": jax.random.uniform(ks[4], (E, E), jnp.float32, -scale, scale),
        "bl": jax.random.uniform(ks[5], (1, E), jnp.float32, -scale, scale),
    }


if __name__ == "__main__":
    L, S, N, E = 8, 8, 2, INPUT_DIM  # seq_len, kv_len, batch, embed_dim

    key = jax.random.PRNGKey(0)
    kq, kk, kv, kp = jax.random.split(key, 4)
    q = jax.random.normal(kq, (L, N, E), jnp.float32)
    k = jax.random.normal(kk, (S, N, E), jnp.float32)
    v = jax.random.normal(kv, (S, N, E), jnp.float32)
    params = init_params(kp, E)

    slab = jax.block_until_ready(pack_params(params))  # one-time parameter packing

    out = simple_attention_forward(q, k, v, slab)
    out = jax.block_until_ready(out)

    ref = _reference(q, k, v, params)
    np.testing.assert_allclose(np.asarray(out), np.asarray(ref), rtol=1e-5, atol=1e-5)

    print("KERNEL_OK")
</pallas_src>

<mosaic_0001>
module attributes {stable_mosaic.version = 11 : i64} {
  func.func @_attention_kernel(%arg0: memref<48x5xf32, #tpu.memory_space<vmem>>, %arg1: memref<72x4xf32, #tpu.memory_space<vmem>>, %arg2: memref<16x4xf32, #tpu.memory_space<vmem>>) attributes {dimension_semantics = [], scalar_prefetch = 0 : i64, scratch_operands = 0 : i64, tpu.core_type = #tpu.core_type<tc>} {
    %c0 = arith.constant 0 : index
    %c0_0 = arith.constant 0 : index
    %0 = vector.load %arg0[%c0, %c0_0] : memref<48x5xf32, #tpu.memory_space<vmem>>, vector<16x5xf32>
    %c16 = arith.constant 16 : index
    %c0_1 = arith.constant 0 : index
    %1 = vector.load %arg0[%c16, %c0_1] : memref<48x5xf32, #tpu.memory_space<vmem>>, vector<16x5xf32>
    %c32 = arith.constant 32 : index
    %c0_2 = arith.constant 0 : index
    %2 = vector.load %arg0[%c32, %c0_2] : memref<48x5xf32, #tpu.memory_space<vmem>>, vector<16x5xf32>
    %3 = tpu.iota {dimensions = array<i32: 0>} : vector<16x16xi32>
    %4 = tpu.iota {dimensions = array<i32: 1>} : vector<16x16xi32>
    %c2_i32 = arith.constant 2 : i32
    %c0_i32 = arith.constant 0 : i32
    %5 = arith.cmpi eq, %c2_i32, %c0_i32 : i32
    %c1_i32 = arith.constant 1 : i32
    %6 = arith.select %5, %c1_i32, %c2_i32 : i32
    %7 = vector.broadcast %6 : i32 to vector<16x16xi32>
    %8 = arith.remsi %3, %7 : vector<16x16xi32>
    %c0_i32_3 = arith.constant 0 : i32
    %9 = vector.broadcast %c0_i32_3 : i32 to vector<16x16xi32>
    %10 = arith.cmpi ne, %8, %9 : vector<16x16xi32>
    %c0_i32_4 = arith.constant 0 : i32
    %11 = vector.broadcast %c0_i32_4 : i32 to vector<16x16xi32>
    %12 = arith.cmpi slt, %8, %11 : vector<16x16xi32>
    %c0_i32_5 = arith.constant 0 : i32
    %13 = arith.cmpi slt, %6, %c0_i32_5 : i32
    %14 = vector.broadcast %13 : i1 to vector<16x16xi1>
    %15 = vector.broadcast %14 : vector<16x16xi1> to vector<16x16xi1>
    %16 = arith.xori %12, %15 : vector<16x16xi1>
    %17 = arith.andi %16, %10 : vector<16x16xi1>
    %18 = vector.broadcast %6 : i32 to vector<16x16xi32>
    %19 = arith.addi %8, %18 : vector<16x16xi32>
    %20 = arith.select %17, %19, %8 : vector<16x16xi1>, vector<16x16xi32>
    %c2_i32_6 = arith.constant 2 : i32
    %c0_i32_7 = arith.constant 0 : i32
    %21 = arith.cmpi eq, %c2_i32_6, %c0_i32_7 : i32
    %c1_i32_8 = arith.constant 1 : i32
    %22 = arith.select %21, %c1_i32_8, %c2_i32_6 : i32
    %23 = vector.broadcast %22 : i32 to vector<16x16xi32>
    %24 = arith.remsi %4, %23 : vector<16x16xi32>
    %c0_i32_9 = arith.constant 0 : i32
    %25 = vector.broadcast %c0_i32_9 : i32 to vector<16x16xi32>
    %26 = arith.cmpi ne, %24, %25 : vector<16x16xi32>
    %c0_i32_10 = arith.constant 0 : i32
    %27 = vector.broadcast %c0_i32_10 : i32 to vector<16x16xi32>
    %28 = arith.cmpi slt, %24, %27 : vector<16x16xi32>
    %c0_i32_11 = arith.constant 0 : i32
    %29 = arith.cmpi slt, %22, %c0_i32_11 : i32
    %30 = vector.broadcast %29 : i1 to vector<16x16xi1>
    %31 = vector.broadcast %30 : vector<16x16xi1> to vector<16x16xi1>
    %32 = arith.xori %28, %31 : vector<16x16xi1>
    %33 = arith.andi %32, %26 : vector<16x16xi1>
    %34 = vector.broadcast %22 : i32 to vector<16x16xi32>
    %35 = arith.addi %24, %34 : vector<16x16xi32>
    %36 = arith.select %33, %35, %24 : vector<16x16xi1>, vector<16x16xi32>
    %37 = arith.cmpi eq, %20, %36 : vector<16x16xi32>
    %cst = arith.constant 0.000000e+00 : f32
    %cst_12 = arith.constant -1.000000e+30 : f32
    %38 = vector.broadcast %cst : f32 to vector<16x16xf32>
    %39 = vector.broadcast %cst_12 : f32 to vector<16x16xf32>
    %40 = arith.select %37, %38, %39 : vector<16x16xi1>, vector<16x16xf32>
    %c64 = arith.constant 64 : index
    %c0_13 = arith.constant 0 : index
    %41 = vector.load %arg1[%c64, %c0_13] : memref<72x4xf32, #tpu.memory_space<vmem>>, vector<1x4xf32>
    %42 = vector.shape_cast %41 : vector<1x4xf32> to vector<1x4xf32>
    %43 = vector.broadcast %42 : vector<1x4xf32> to vector<16x4xf32>
    %c0_14 = arith.constant 0 : index
    %c0_15 = arith.constant 0 : index
    %44 = vector.load %arg1[%c0_14, %c0_15] : memref<72x4xf32, #tpu.memory_space<vmem>>, vector<5x2xf32>
    %c8 = arith.constant 8 : index
    %c0_16 = arith.constant 0 : index
    %45 = vector.load %arg1[%c8, %c0_16] : memref<72x4xf32, #tpu.memory_space<vmem>>, vector<5x2xf32>
    %c16_17 = arith.constant 16 : index
    %c0_18 = arith.constant 0 : index
    %46 = vector.load %arg1[%c16_17, %c0_18] : memref<72x4xf32, #tpu.memory_space<vmem>>, vector<5x2xf32>
    %c48 = arith.constant 48 : index
    %c0_19 = arith.constant 0 : index
    %47 = vector.load %arg1[%c48, %c0_19] : memref<72x4xf32, #tpu.memory_space<vmem>>, vector<2x4xf32>
    %cst_20 = arith.constant dense<0.000000e+00> : vector<16x2xf32>
    %48 = tpu.matmul %0, %44, %cst_20 {dimension_numbers = #tpu.dot_dimension_numbers<[1], [0], [0], [1], [0, 0, 1, 1], [], []>} : vector<16x5xf32>, vector<5x2xf32>, vector<16x2xf32> -> vector<16x2xf32>
    %cst_21 = arith.constant dense<0.000000e+00> : vector<16x2xf32>
    %49 = tpu.matmul %1, %45, %cst_21 {dimension_numbers = #tpu.dot_dimension_numbers<[1], [0], [0], [1], [0, 0, 1, 1], [], []>} : vector<16x5xf32>, vector<5x2xf32>, vector<16x2xf32> -> vector<16x2xf32>
    %cst_22 = arith.constant dense<0.000000e+00> : vector<16x2xf32>
    %50 = tpu.matmul %2, %46, %cst_22 {dimension_numbers = #tpu.dot_dimension_numbers<[1], [0], [0], [1], [0, 0, 1, 1], [], []>} : vector<16x5xf32>, vector<5x2xf32>, vector<16x2xf32> -> vector<16x2xf32>
    %cst_23 = arith.constant dense<0.000000e+00> : vector<16x16xf32>
    %51 = tpu.matmul %48, %49, %cst_23 {dimension_numbers = #tpu.dot_dimension_numbers<[1], [1], [0], [0], [0, 0, 1, 0], [], []>} : vector<16x2xf32>, vector<16x2xf32>, vector<16x16xf32> -> vector<16x16xf32>
    %52 = arith.addf %51, %40 : vector<16x16xf32>
    %cst_24 = arith.constant dense<0xFF800000> : vector<16xf32>
    %53 = vector.multi_reduction <maximumf>, %52, %cst_24 [1] : vector<16x16xf32> to vector<16xf32>
    %54 = vector.shape_cast %53 : vector<16xf32> to vector<16x1xf32>
    %55 = vector.broadcast %54 : vector<16x1xf32> to vector<16x16xf32>
    %56 = arith.subf %52, %55 : vector<16x16xf32>
    %57 = math.exp %56 : vector<16x16xf32>
    %cst_25 = arith.constant dense<0.000000e+00> : vector<16xf32>
    %58 = vector.multi_reduction <add>, %57, %cst_25 [1] : vector<16x16xf32> to vector<16xf32>
    %59 = vector.shape_cast %58 : vector<16xf32> to vector<16x1xf32>
    %60 = tpu.reciprocal %59 : vector<16x1xf32> -> vector<16x1xf32>
    %61 = vector.broadcast %60 : vector<16x1xf32> to vector<16x16xf32>
    %62 = arith.mulf %57, %61 : vector<16x16xf32>
    %cst_26 = arith.constant dense<0.000000e+00> : vector<16x2xf32>
    %63 = tpu.matmul %62, %50, %cst_26 {dimension_numbers = #tpu.dot_dimension_numbers<[1], [0], [0], [1], [0, 0, 1, 1], [], []>} : vector<16x16xf32>, vector<16x2xf32>, vector<16x2xf32> -> vector<16x2xf32>
    %cst_27 = arith.constant dense<0.000000e+00> : vector<16x4xf32>
    %64 = tpu.matmul %63, %47, %cst_27 {dimension_numbers = #tpu.dot_dimension_numbers<[1], [0], [0], [1], [0, 0, 1, 1], [], []>} : vector<16x2xf32>, vector<2x4xf32>, vector<16x4xf32> -> vector<16x4xf32>
    %65 = arith.addf %43, %64 : vector<16x4xf32>
    %c24 = arith.constant 24 : index
    %c0_28 = arith.constant 0 : index
    %66 = vector.load %arg1[%c24, %c0_28] : memref<72x4xf32, #tpu.memory_space<vmem>>, vector<5x2xf32>
    %c32_29 = arith.constant 32 : index
    %c0_30 = arith.constant 0 : index
    %67 = vector.load %arg1[%c32_29, %c0_30] : memref<72x4xf32, #tpu.memory_space<vmem>>, vector<5x2xf32>
    %c40 = arith.constant 40 : index
    %c0_31 = arith.constant 0 : index
    %68 = vector.load %arg1[%c40, %c0_31] : memref<72x4xf32, #tpu.memory_space<vmem>>, vector<5x2xf32>
    %c56 = arith.constant 56 : index
    %c0_32 = arith.constant 0 : index
    %69 = vector.load %arg1[%c56, %c0_32] : memref<72x4xf32, #tpu.memory_space<vmem>>, vector<2x4xf32>
    %cst_33 = arith.constant dense<0.000000e+00> : vector<16x2xf32>
    %70 = tpu.matmul %0, %66, %cst_33 {dimension_numbers = #tpu.dot_dimension_numbers<[1], [0], [0], [1], [0, 0, 1, 1], [], []>} : vector<16x5xf32>, vector<5x2xf32>, vector<16x2xf32> -> vector<16x2xf32>
    %cst_34 = arith.constant dense<0.000000e+00> : vector<16x2xf32>
    %71 = tpu.matmul %1, %67, %cst_34 {dimension_numbers = #tpu.dot_dimension_numbers<[1], [0], [0], [1], [0, 0, 1, 1], [], []>} : vector<16x5xf32>, vector<5x2xf32>, vector<16x2xf32> -> vector<16x2xf32>
    %cst_35 = arith.constant dense<0.000000e+00> : vector<16x2xf32>
    %72 = tpu.matmul %2, %68, %cst_35 {dimension_numbers = #tpu.dot_dimension_numbers<[1], [0], [0], [1], [0, 0, 1, 1], [], []>} : vector<16x5xf32>, vector<5x2xf32>, vector<16x2xf32> -> vector<16x2xf32>
    %cst_36 = arith.constant dense<0.000000e+00> : vector<16x16xf32>
    %73 = tpu.matmul %70, %71, %cst_36 {dimension_numbers = #tpu.dot_dimension_numbers<[1], [1], [0], [0], [0, 0, 1, 0], [], []>} : vector<16x2xf32>, vector<16x2xf32>, vector<16x16xf32> -> vector<16x16xf32>
    %74 = arith.addf %73, %40 : vector<16x16xf32>
    %cst_37 = arith.constant dense<0xFF800000> : vector<16xf32>
    %75 = vector.multi_reduction <maximumf>, %74, %cst_37 [1] : vector<16x16xf32> to vector<16xf32>
    %76 = vector.shape_cast %75 : vector<16xf32> to vector<16x1xf32>
    %77 = vector.broadcast %76 : vector<16x1xf32> to vector<16x16xf32>
    %78 = arith.subf %74, %77 : vector<16x16xf32>
    %79 = math.exp %78 : vector<16x16xf32>
    %cst_38 = arith.constant dense<0.000000e+00> : vector<16xf32>
    %80 = vector.multi_reduction <add>, %79, %cst_38 [1] : vector<16x16xf32> to vector<16xf32>
    %81 = vector.shape_cast %80 : vector<16xf32> to vector<16x1xf32>
    %82 = tpu.reciprocal %81 : vector<16x1xf32> -> vector<16x1xf32>
    %83 = vector.broadcast %82 : vector<16x1xf32> to vector<16x16xf32>
    %84 = arith.mulf %79, %83 : vector<16x16xf32>
    %cst_39 = arith.constant dense<0.000000e+00> : vector<16x2xf32>
    %85 = tpu.matmul %84, %72, %cst_39 {dimension_numbers = #tpu.dot_dimension_numbers<[1], [0], [0], [1], [0, 0, 1, 1], [], []>} : vector<16x16xf32>, vector<16x2xf32>, vector<16x2xf32> -> vector<16x2xf32>
    %cst_40 = arith.constant dense<0.000000e+00> : vector<16x4xf32>
    %86 = tpu.matmul %85, %69, %cst_40 {dimension_numbers = #tpu.dot_dimension_numbers<[1], [0], [0], [1], [0, 0, 1, 1], [], []>} : vector<16x2xf32>, vector<2x4xf32>, vector<16x4xf32> -> vector<16x4xf32>
    %87 = arith.addf %65, %86 : vector<16x4xf32>
    %c0_41 = arith.constant 0 : index
    %c0_42 = arith.constant 0 : index
    %88 = vector.load %arg2[%c0_41, %c0_42] : memref<16x4xf32, #tpu.memory_space<vmem>>, vector<16x4xf32>
    tpu.vector_store %arg2[%c0_41, %c0_42], %87 {strides = array<i32>} : memref<16x4xf32, #tpu.memory_space<vmem>>, vector<16x4xf32>,
    return
  }
}

</mosaic_0001>

<bundles_post_ra>
// kernel: simple_attention_forward.1
= control target key start
LH: loop header
LB: loop body
LE: loop exit
PB: predicated region body
PF: predicated region fallthrough
CT: control target
= control target key end

     0   :  { %vm78_vm0 = vcmask 1044480   ;;  %vm71_vm1 = vcmask 39936   ;;  %vm325_vm2 = vcmask 15360   ;;  %v17_v15 = vlaneseq  ;;  %s1468_s1 = inlined_call_operand.vmem [shape: f32[72,4], index: 1, kind: input, shape index: {}]   ;;  %s1469_s0 = inlined_call_operand.vmem [shape: f32[48,5], index: 0, kind: input, shape index: {}]   ;;  %s1470_s2 = inlined_call_operand.vmem [shape: f32[16,4], index: 2, kind: output, shape index: {}]  }
   0x1   :  { %v67_v0 = vld [vmem:[%s1468_s1] sm:$0x1f]  ;;  %v1336_v2 = vld [vmem:[%s1469_s0 + $0x8] sm:$0xff]  ;;  %v1346_v4 = vld [vmem:[%s1469_s0 + $0x10] sm:$0xff]  ;;  %v1311_v22 = vmov -1e+30  }
   0x2   :  { %v11_v1 = vld [vmem:[%s1469_s0] sm:$0xff]  ;;  %1202 = vmatprep.subr.msk.mxu1 %vm78_vm0, %v67_v0  ;;  %v68_v3 = vld [vmem:[%s1468_s1 + $0x8] sm:$0x1f]  ;;  %v1358_v5 = vld [vmem:[%s1469_s0 + $0x18] sm:$0xff]  ;;  %v18_v16 = vshrl.u32 %v17_v15, 7  ;;  %v21_v17 = vand.u32 127, %v17_v15 }
   0x3   :  { %1204 = vmatprep.mubr.msk.f32.mxu1 %vm71_vm1, %v11_v1  ;;  %1203 = vmatpush3.msk.msra.mxu1 %vm78_vm0, %v67_v0  ;;  %vm1365_vm3 = vmpackc.low %vm325_vm2, %vm325_vm2  ;;  %v69_v12 = vld [vmem:[%s1468_s1 + $0x10] sm:$0x1f]  ;;  %v1381_v13 = vld [vmem:[%s1469_s0 + $0x20] sm:$0xff]  ;;  %vm413_vm6 = vcmask 130048   ;;  %vm523_vm7 = vcmask 1041408   ;;  %vm1118_vm8 = vcmask 31744  }
   0x4   :  { %1205 = vmatmul.mubr.msk.f32.vlgmr.msra.gmra.mrb[0].mxu1 %vm71_vm1, %v1336_v2  ;;  %1207 = vmatprep.subr.msk.mxu1 %vm78_vm0, %v68_v3  ;;  %v1386_v14 = vld [vmem:[%s1469_s0 + $0x28] sm:$0xff]  ;;  %v19_v18 = vadd.s32 8, %v18_v16  ;;  %v50_v19 = vand.u32 1, %v21_v17  ;;  %v26_v20 = vand.u32 1, %v18_v16  ;;  %v70_v44 = vld [vmem:[%s1468_s1 + $0x30] sm:$0x3] }
   0x5   :  { %1208 = vmatpush3.msk.msra.mxu1 %vm78_vm0, %v68_v3  ;;  %1209 = vmatprep.mubr.msk.f32.mxu1 %vm71_vm1, %v1346_v4  ;;  %v605_v51 = vld [vmem:[%s1468_s1 + $0x20] sm:$0x1f]  ;;  %v604_v52 = vld [vmem:[%s1468_s1 + $0x18] sm:$0x1f]  ;;  %v606_v60 = vld [vmem:[%s1468_s1 + $0x28] sm:$0x1f] }
   0x6   :  { %1212 = vmatprep.subr.msk.mxu0 %vm78_vm0, %v69_v12  ;;  %1214 = vmatprep.mubr.msk.f32.mxu0 %vm71_vm1, %v1381_v13  ;;  %v33_v21 = vand.u32 1, %v19_v18  ;;  %vm58_vm4 = vcmp.eq.s32.totalorder %v26_v20, %v50_v19  ;;  %v607_v16 = vld [vmem:[%s1468_s1 + $0x38] sm:$0x3] }
   0x7   :  { %1213 = vmatpush3.msk.msra.mxu0 %vm78_vm0, %v69_v12  ;;  %v1394_v23 = vsel %vm58_vm4, 0.0, %v1311_v22 }
   0x8   :  { %1210 = vmatmul.mubr.msk.f32.vlgmr.msra.gmra.mrb[2].mxu1 %vm71_vm1, %v1358_v5  ;;  %1215 = vmatmul.mubr.msk.f32.vlgmr.msra.gmra.mrb[0].mxu0 %vm71_vm1, %v1386_v14  ;;  %vm59_vm5 = vcmp.eq.s32.totalorder %v33_v21, %v50_v19 }
   0x9   :  { %v1396_v25 = vsel %vm59_vm5, 0.0, %v1311_v22 }
  0xd7   :  { %v1206_v6 = vpop.f32.mrb[0].mxu1 }
  0xd8   :  { %v148_v7 = vpop.f32.mrb[1].mxu1 }
  0xd9   :  { %1221 = vmatprep.mubr.msk.f32.mxu1 %vm325_vm2, %v148_v7 }
  0xdb   :  { %v1211_v8 = vpop.f32.mrb[2].mxu1  ;;  %v1216_v41 = vpop.f32.mrb[0].mxu0 }
  0xdc   :  { %v232_v9 = vpop.f32.mrb[3].mxu1  ;;  %v316_v42 = vpop.f32.mrb[1].mxu0 }
  0xdd   :  { %v1270_v11 = vpack.c.bf16 %v1211_v8, %v232_v9  ;;  %v1276_v43 = vpack.c.bf16 %v1216_v41, %v316_v42 }
  0xdf   :  { %1272 = vmatprep.subr.msk.bf16.mxu1 %vm1365_vm3, %v1270_v11  ;;  %1277 = vmatprep.subr.bf16.mxu0 %v1276_v43 }
  0xe0   :  { %1275 = vmatpush3.bf16.xpose.msk.msra.mxu1 %vm1365_vm3, %v1270_v11  ;;  %1279 = vmatpush3.bf16.msra.mxu0 %v1276_v43 }
  0xe1   :  { %1231 = vmatprep.subr.msk.mxu0 %vm523_vm7, %v70_v44  ;;  %1236 = vmatprep.subr.msk.mxu1 %vm78_vm0, %v604_v52 }
  0xe7   :  { %1222 = vmatmul.mubr.msk.f32.vlgmr.msra.gmra.mrb[4].mxu1 %vm325_vm2, %v1206_v6 }
  0xe8   :  { %1238 = vmatprep.mubr.msk.f32.mxu1 %vm71_vm1, %v11_v1  ;;  %1237 = vmatpush3.msk.msra.mxu1 %vm78_vm0, %v604_v52 }
  0xe9   :  { %1246 = vmatprep.subr.msk.mxu1 %vm78_vm0, %v606_v60 }
  0xeb   :  { %1239 = vmatmul.mubr.msk.f32.vlgmr.msra.gmra.mrb[6].mxu1 %vm71_vm1, %v1336_v2 }
  0xec   :  { %1248 = vmatprep.mubr.msk.f32.mxu1 %vm71_vm1, %v1381_v13  ;;  %1247 = vmatpush3.msk.msra.mxu1 %vm78_vm0, %v606_v60 }
  0xef   :  { %1249 = vmatmul.mubr.msk.f32.vlgmr.msra.gmra.mrb[8].mxu1 %vm71_vm1, %v1386_v14 }
 0x1ba   :  { %v1223_v24 = vpop.f32.mrb[4].mxu1 }
 0x1bb   :  { %v404_v26 = vpop.f32.mrb[5].mxu1  ;;  %v410_v28 = vadd.f32 %v1223_v24, %v1396_v25 }
 0x1bc   :  { %v405_v27 = vadd.f32 %v404_v26, %v1394_v23 }
 0x1bd   :  { %v417_v30 = vsel %vm413_vm6, %v410_v28, -inf }
 0x1be   :  { %v414_v29 = vsel %vm413_vm6, %v405_v27, -inf  ;;  %v1240_v55 = vpop.f32.mrb[6].mxu1 }
 0x1bf   :  { %415 = vmax.xlane.f32.xlu0 %v414_v29  ;;  %v677_v56 = vpop.f32.mrb[7].mxu1 }
 0x1c2   :  { %v1250_v13 = vpop.f32.mrb[8].mxu1 }
 0x1c3   :  { %418 = vmax.xlane.f32.xlu0 %v417_v30  ;;  %v833_v14 = vpop.f32.mrb[9].mxu1 }
 0x1c4   :  { %v1286_v15 = vpack.c.bf16 %v1250_v13, %v833_v14 }
 0x1c6   :  { %1287 = vmatprep.subr.bf16.mxu1 %v1286_v15 }
 0x1c7   :  { %1289 = vmatpush3.bf16.msra.mxu1 %v1286_v15 }
 0x24c   :  { %v416_v31 = vpop.xlane.xlu0 %415 }
 0x24d   :  { %v420_v32 = vsub.f32 %v405_v27, %v416_v31 }
 0x24f   :  { %v422_v33 = vmul.f32 1.442695, %v420_v32 }
 0x250   :  { %v419_v34 = vpop.xlane.xlu0 %418 }
 0x251   :  { %1295 = vpow2.f32 %v422_v33  ;;  %v421_v35 = vsub.f32 %v410_v28, %v419_v34 }
 0x253   :  { %v424_v36 = vmul.f32 1.442695, %v421_v35 }
 0x255   :  { %1297 = vpow2.f32 %v424_v36 }
 0x25b   :  { %v1296_v37 = vpop.eup %1295 }
 0x25c   :  { %v426_v38 = vsel %vm413_vm6, %v1296_v37, 0.0 }
 0x25d   :  { %427 = vadd.xlane.f32.xlu1 %v426_v38 }
 0x25f   :  { %v1298_v39 = vpop.eup %1297 }
 0x260   :  { %v429_v40 = vsel %vm413_vm6, %v1298_v39, 0.0 }
 0x261   :  { %430 = vadd.xlane.f32.xlu1 %v429_v40 }
 0x2ea   :  { %v428_v45 = vpop.xlane.xlu1 %427 }
 0x2eb   :  { %1299 = vrcp.f32 %v428_v45 }
 0x2ee   :  { %v431_v46 = vpop.xlane.xlu1 %430 }
 0x2ef   :  { %1301 = vrcp.f32 %v431_v46 }
 0x2f5   :  { %v1300_v47 = vpop.eup %1299 }
 0x2f6   :  { %v434_v48 = vmul.f32 %v1300_v47, %v1296_v37 }
 0x2f8   :  { %1228 = vmatprep.mubr.msk.f32.mxu0 %vm413_vm6, %v434_v48 }
 0x2f9   :  { %v1302_v49 = vpop.eup %1301 }
 0x2fa   :  { %v435_v50 = vmul.f32 %v1302_v49, %v1298_v39 }
 0x2fc   :  { %1229 = vmatmul.mubr.msk.f32.vlgmr.msra.gmra.mrb[2].mxu0 %vm413_vm6, %v435_v50 }
 0x2fd   :  { %1232 = vmatpush3.msk.msra.mxu0 %vm523_vm7, %v70_v44 }
 0x2fe   :  { %1241 = vmatprep.subr.msk.mxu0 %vm78_vm0, %v605_v51 }
 0x3cf   :  { %v1230_v53 = vpop.f32.mrb[2].mxu0 }
 0x3d0   :  { %v508_v54 = vpop.f32.mrb[3].mxu0 }
 0x3d1   :  { %1233 = vmatprep.mubr.msk.f32.mxu0 %vm325_vm2, %v508_v54 }
 0x3d2   :  { %1234 = vmatmul.mubr.msk.f32.vlgmr.msra.gmra.mrb[4].mxu0 %vm325_vm2, %v1230_v53 }
 0x3d3   :  { %1242 = vmatpush3.msk.msra.mxu0 %vm78_vm0, %v605_v51  ;;  %1243 = vmatprep.mubr.msk.f32.mxu0 %vm71_vm1, %v1346_v4 }
 0x3d6   :  { %1244 = vmatmul.mubr.msk.f32.vlgmr.msra.gmra.mrb[6].mxu0 %vm71_vm1, %v1358_v5 }
 0x3d7   :  { %1255 = vmatprep.mubr.msk.f32.mxu0 %vm325_vm2, %v677_v56 }
 0x4a9   :  { %v1245_v57 = vpop.f32.mrb[6].mxu0 }
 0x4aa   :  { %v755_v58 = vpop.f32.mrb[7].mxu0 }
 0x4ab   :  { %v1280_v59 = vpack.c.bf16 %v1245_v57, %v755_v58 }
 0x4ad   :  { %1282 = vmatprep.subr.msk.bf16.mxu0 %vm1365_vm3, %v1280_v59 }
 0x4ae   :  { %1285 = vmatpush3.bf16.xpose.msk.msra.mxu0 %vm1365_vm3, %v1280_v59 }
 0x4af   :  { %1265 = vmatprep.subr.msk.mxu0 %vm523_vm7, %v607_v16 }
 0x4b5   :  { %1256 = vmatmul.mubr.msk.f32.vlgmr.msra.gmra.mrb[8].mxu0 %vm325_vm2, %v1240_v55 }
 0x4b6   :  { %1266 = vmatpush3.msk.msra.mxu0 %vm523_vm7, %v607_v16 }
 0x588   :  { %v1257_v61 = vpop.f32.mrb[8].mxu0 }
 0x589   :  { %v926_v62 = vadd.f32 %v1257_v61, %v1396_v25  ;;  %v920_v63 = vpop.f32.mrb[9].mxu0  ;;  %v1125_v25 = vld [vmem:[%s1468_s1 + $0x40] ss:$0 sm:$0xff] }
 0x58a   :  { %v921_v0 = vadd.f32 %v920_v63, %v1394_v23 }
 0x58b   :  { %v932_v1 = vsel %vm413_vm6, %v926_v62, -inf }
 0x58c   :  { %933 = vmax.xlane.f32.xlu1 %v932_v1  ;;  %v929_v2 = vsel %vm413_vm6, %v921_v0, -inf }
 0x58d   :  { %930 = vmax.xlane.f32.xlu0 %v929_v2 }
 0x619   :  { %v934_v3 = vpop.xlane.xlu1 %933 }
 0x61a   :  { %v936_v4 = vsub.f32 %v926_v62, %v934_v3  ;;  %v931_v5 = vpop.xlane.xlu0 %930 }
 0x61b   :  { %v935_v6 = vsub.f32 %v921_v0, %v931_v5 }
 0x61c   :  { %v939_v7 = vmul.f32 1.442695, %v936_v4 }
 0x61d   :  { %v937_v8 = vmul.f32 1.442695, %v935_v6 }
 0x61e   :  { %1303 = vpow2.f32 %v939_v7 }
 0x61f   :  { %1305 = vpow2.f32 %v937_v8 }
 0x628   :  { %v1304_v9 = vpop.eup %1303 }
 0x629   :  { %v1306_v10 = vpop.eup %1305  ;;  %v944_v11 = vsel %vm413_vm6, %v1304_v9, 0.0 }
 0x62a   :  { %945 = vadd.xlane.f32.xlu1 %v944_v11  ;;  %v941_v12 = vsel %vm413_vm6, %v1306_v10, 0.0 }
 0x62b   :  { %942 = vadd.xlane.f32.xlu0 %v941_v12 }
 0x6b7   :  { %v946_v17 = vpop.xlane.xlu1 %945 }
 0x6b8   :  { %1307 = vrcp.f32 %v946_v17  ;;  %v943_v18 = vpop.xlane.xlu0 %942 }
 0x6b9   :  { %1309 = vrcp.f32 %v943_v18 }
 0x6c2   :  { %v1308_v19 = vpop.eup %1307 }
 0x6c3   :  { %v1310_v20 = vpop.eup %1309  ;;  %v950_v22 = vmul.f32 %v1308_v19, %v1304_v9 }
 0x6c4   :  { %v949_v21 = vmul.f32 %v1310_v20, %v1306_v10 }
 0x6c6   :  { %1262 = vmatprep.mubr.msk.f32.mxu1 %vm413_vm6, %v949_v21 }
 0x6c7   :  { %1263 = vmatmul.mubr.msk.f32.vlgmr.msra.gmra.mrb[10].mxu1 %vm413_vm6, %v950_v22 }
 0x79a   :  { %v1264_v23 = vpop.f32.mrb[10].mxu1 }
 0x79b   :  { %v1023_v24 = vpop.f32.mrb[11].mxu1 }
 0x79c   :  { %1267 = vmatprep.mubr.msk.f32.mxu0 %vm325_vm2, %v1023_v24 }
 0x79d   :  { %1268 = vmatmul.mubr.msk.f32.vlgmr.msra.gmra.mrb[4].mxu0 %vm325_vm2, %v1264_v23 }
 0x870   :  { %v1269_v26 = vpop.f32.mrb[4].mxu0 }
 0x871   :  { %v1290_v27 = vadd.f32 %v1269_v26, %v1125_v25  ;;  %v1107_v28 = vpop.f32.mrb[5].mxu0 }
 0x872   :  { %v1291_v29 = vadd.f32 %v1125_v25, %v1107_v28 }
 0x873   :  { %1120 = vst.msk [vmem:[%s1470_s2 + $0x8] sm:$0xff] %vm1118_vm8, %v1290_v27 }
 0x874   :  { %1119 = vst.msk [vmem:[%s1470_s2] sm:$0xff] %vm1118_vm8, %v1291_v29 }

</bundles_post_ra>
